<compile_context>
chip_gen: v6e
topology: v6e:2x2x1
jax: 0.10.0
libtpu: 0.0.40
codegen_flags: <defaults>
</compile_context>

<pallas_src>
import functools
import math

import jax
import jax.numpy as jnp
from jax.experimental import pallas as pl
from jax.experimental.pallas import tpu as pltpu

_LANES = 128
_PAD_X = -1.0e4  # focal(x=-1e4, t=0) == 0 -> padded elements are value-neutral
                 # (belt & braces: kernels also mask by global element index).


def _round_up(a, b):
    return ((a + b - 1) // b) * b


def _focal_weight(one_minus_pt, gamma):
    """(1 - p_t) ** gamma. Integer gamma -> VPU multiply chain (no EUP pow)."""
    g = float(gamma)
    if g == 0.0:
        return jnp.ones_like(one_minus_pt)
    if g.is_integer() and 0 < g <= 8:
        w = one_minus_pt
        for _ in range(int(g) - 1):
            w = w * one_minus_pt
        return w
    # Clamp so rounding (p_t marginally > 1) never gives pow(negative, g) = NaN.
    return jnp.power(jnp.maximum(one_minus_pt, 0.0), jnp.float32(g))


def _bce_and_weight(x_ref, t_ref, gamma, soft_targets):
    x = x_ref[...].astype(jnp.float32)
    t = t_ref[...].astype(jnp.float32)
    e = jnp.exp(-jnp.abs(x))                             # EUP #1
    # Numerically stable BCE-with-logits: max(x,0) - x*t + log1p(exp(-|x|))
    bce = jnp.maximum(x, 0.0) - x * t + jnp.log1p(e)     # EUP #2
    if soft_targets:
        p_t = jnp.exp(-bce)                              # EUP #3 (general labels)
    else:
        # Hard {0,1} targets: exp(-bce) == s / (1 + e) with
        #   s = 1 if (x >= 0) == (t == 1) else e
        # -> replaces the third EUP exp with a reciprocal + VPU selects.
        r = 1.0 / (1.0 + e)
        s = jnp.where(x >= 0.0,
                      jnp.where(t >= 0.5, 1.0, e),
                      jnp.where(t >= 0.5, e, 1.0))
        p_t = s * r
    return bce, _focal_weight(1.0 - p_t, gamma)


def _focal_reduce_kernel(x_ref, t_ref, out_ref, acc_ref, *, gamma, soft_targets,
                         n_valid, tb, steps, total_blocks, fold):
    k = pl.program_id(1)

    @pl.when(k == 0)
    def _():
        acc_ref[...] = jnp.zeros_like(acc_ref)

    bce, w = _bce_and_weight(x_ref, t_ref, gamma, soft_targets)

    # Mask the ragged tail (n not a multiple of tb*128) and duplicate blocks
    # (index_map clamped when total_blocks does not split evenly across the
    # parallel axis).
    blk = pl.program_id(0) * steps + k
    base = jnp.minimum(blk, total_blocks - 1) * (tb * _LANES)
    idx = (base
           + jax.lax.broadcasted_iota(jnp.int32, (tb, _LANES), 0) * _LANES
           + jax.lax.broadcasted_iota(jnp.int32, (tb, _LANES), 1))
    valid = (idx < n_valid) & (blk < total_blocks)
    contrib = jnp.where(valid, w * bce, 0.0)

    if fold:  # fold (tb,128) -> (8,128) with VPU adds (keeps acc tiny)
        contrib = contrib.reshape(tb // 8, 8, _LANES).sum(axis=0)
    acc_ref[...] += contrib

    @pl.when(k == pl.num_programs(1) - 1)
    def _():
        out_ref[...] = acc_ref[...]


def _focal_none_kernel(x_ref, t_ref, out_ref, *, gamma, alpha, soft_targets):
    bce, w = _bce_and_weight(x_ref, t_ref, gamma, soft_targets)
    out_ref[...] = (jnp.float32(alpha) * w * bce).astype(out_ref.dtype)


def focal_loss(inputs, targets, *, alpha=0.25, gamma=2.0, reduction="mean",
               soft_targets=False, block_rows=4096):
    """Pallas implementation of FocalLoss.forward(inputs, targets).

    soft_targets=False assumes hard {0,1} targets (one-hot), enabling the
    cheaper p_t derivation; set soft_targets=True for arbitrary soft labels.
    """
    assert inputs.shape == targets.shape
    orig_shape = inputs.shape
    n = math.prod(orig_shape) if orig_shape else 1

    x_flat = inputs.reshape(-1)
    t_flat = targets.reshape(-1)

    rows = pl.cdiv(n, _LANES)
    pad = rows * _LANES - n
    if pad:
        # TODO(synk): a manual-DMA (memory_space=pl.ANY) path could avoid this
        # single <=127-element pad copy; negligible for this module's shapes.
        x_flat = jnp.pad(x_flat, (0, pad), constant_values=_PAD_X)
        t_flat = jnp.pad(t_flat, (0, pad), constant_values=0)
    x2 = x_flat.reshape(rows, _LANES)
    t2 = t_flat.reshape(rows, _LANES)

    # Row-block size: multiple of 8 (sublane), capped at ~4 MiB per input tile
    # so 2 inputs x 2 DMA buffers (+ output) fit the VMEM budget on v5e..v7x.
    max_tb = max(8, (4 << 20) // (_LANES * x2.dtype.itemsize))
    tb = min(_round_up(block_rows, 8), max_tb)
    if rows <= tb:
        tb = rows                      # single block == full array extent
    total_blocks = pl.cdiv(rows, tb)
    in_tile = tb * _LANES * x2.dtype.itemsize

    if reduction in ("mean", "sum"):
        # Split the reduction across (up to) 2 cores; each split owns a
        # contiguous range of row-blocks and its own partial-sum output block.
        num_splits = 2 if total_blocks >= 2 else 1
        steps = pl.cdiv(total_blocks, num_splits)
        fold = (tb % 8 == 0) and (tb > 8)
        acc_rows = 8 if fold else tb

        kernel = functools.partial(
            _focal_reduce_kernel, gamma=gamma, soft_targets=soft_targets,
            n_valid=n, tb=tb, steps=steps, total_blocks=total_blocks, fold=fold)

        vmem_limit = min(48 << 20,
                         max(16 << 20,
                             4 * in_tile + 4 * acc_rows * _LANES * 4 + (2 << 20)))

        in_map = lambda c, k: (jnp.minimum(c * steps + k, total_blocks - 1), 0)
        out = pl.pallas_call(
            kernel,
            out_shape=jax.ShapeDtypeStruct((num_splits * acc_rows, _LANES),
                                           jnp.float32),
            grid_spec=pltpu.PrefetchScalarGridSpec(
                num_scalar_prefetch=0,
                grid=(num_splits, steps),
                in_specs=[pl.BlockSpec((tb, _LANES), in_map),
                          pl.BlockSpec((tb, _LANES), in_map)],
                out_specs=pl.BlockSpec((acc_rows, _LANES), lambda c, k: (c, 0)),
                scratch_shapes=[pltpu.VMEM((acc_rows, _LANES), jnp.float32)],
            ),
            compiler_params=pltpu.CompilerParams(
                dimension_semantics=("parallel", "arbitrary"),
                vmem_limit_bytes=int(vmem_limit)),
            cost_estimate=pl.CostEstimate(
                flops=14 * rows * _LANES,
                transcendentals=(3 if soft_targets else 2) * rows * _LANES,
                bytes_accessed=2 * rows * _LANES * x2.dtype.itemsize),
        )(x2, t2)

        scale = float(alpha) / float(n) if reduction == "mean" else float(alpha)
        return jnp.sum(out) * jnp.float32(scale)

    # reduction == 'none': elementwise, lane-dense output in input float dtype.
    out_dtype = (inputs.dtype if jnp.issubdtype(inputs.dtype, jnp.floating)
                 else jnp.float32)
    out_tile = tb * _LANES * jnp.dtype(out_dtype).itemsize
    vmem_limit = min(48 << 20,
                     max(16 << 20, 4 * in_tile + 2 * out_tile + (2 << 20)))
    kernel = functools.partial(_focal_none_kernel, gamma=gamma,
                               alpha=float(alpha), soft_targets=soft_targets)
    out2 = pl.pallas_call(
        kernel,
        out_shape=jax.ShapeDtypeStruct((rows, _LANES), out_dtype),
        grid_spec=pltpu.PrefetchScalarGridSpec(
            num_scalar_prefetch=0,
            grid=(total_blocks,),
            in_specs=[pl.BlockSpec((tb, _LANES), lambda i: (i, 0)),
                      pl.BlockSpec((tb, _LANES), lambda i: (i, 0))],
            out_specs=pl.BlockSpec((tb, _LANES), lambda i: (i, 0)),
        ),
        compiler_params=pltpu.CompilerParams(
            dimension_semantics=("parallel",),
            vmem_limit_bytes=int(vmem_limit)),
        cost_estimate=pl.CostEstimate(
            flops=14 * rows * _LANES,
            transcendentals=(3 if soft_targets else 2) * rows * _LANES,
            bytes_accessed=(2 * rows * _LANES * x2.dtype.itemsize
                            + rows * _LANES * jnp.dtype(out_dtype).itemsize)),
    )(x2, t2)

    out_flat = out2.reshape(-1)
    if pad:
        out_flat = out_flat[:n]
    return out_flat.reshape(orig_shape)


def _focal_loss_ref(inputs, targets, *, alpha=0.25, gamma=2.0, reduction="mean"):
    """Pure-JAX reference mirroring the PyTorch module."""
    x = inputs.astype(jnp.float32)
    t = targets.astype(jnp.float32)
    bce = jnp.maximum(x, 0.0) - x * t + jnp.log1p(jnp.exp(-jnp.abs(x)))
    p_t = jnp.exp(-bce)
    focal = alpha * (1.0 - p_t) ** gamma * bce
    if reduction == "mean":
        return jnp.mean(focal)
    if reduction == "sum":
        return jnp.sum(focal)
    return focal.astype(inputs.dtype)


if __name__ == "__main__":
    key = jax.random.PRNGKey(0)
    k1, k2, k3, k4, k5 = jax.random.split(key, 5)

    # Shape implied by the module: [batch_size, num_classes] logits + one-hot.
    batch, num_classes = 8, 16
    logits = jax.random.normal(k1, (batch, num_classes), dtype=jnp.float32)
    labels = jax.random.randint(k2, (batch,), 0, num_classes)
    targets = jax.nn.one_hot(labels, num_classes, dtype=jnp.float32)

    for reduction in ("mean", "sum", "none"):
        out = jax.block_until_ready(
            focal_loss(logits, targets, alpha=0.25, gamma=2.0,
                       reduction=reduction))
        ref = _focal_loss_ref(logits, targets, alpha=0.25, gamma=2.0,
                              reduction=reduction)
        assert jnp.allclose(out, ref, rtol=1e-5, atol=1e-6), (reduction, out, ref)

    # Ragged shape (n % 128 != 0) exercises the in-kernel tail masking.
    x_r = jax.random.normal(k3, (7, 13), dtype=jnp.float32)
    t_r = (jax.random.uniform(k4, (7, 13)) > 0.5).astype(jnp.float32)
    for reduction in ("mean", "none"):
        out = jax.block_until_ready(focal_loss(x_r, t_r, reduction=reduction))
        ref = _focal_loss_ref(x_r, t_r, reduction=reduction)
        assert jnp.allclose(out, ref, rtol=1e-5, atol=1e-6), (reduction, out, ref)

    # Multi-block + 2-way parallel reduction split (with a clamped duplicate
    # block), non-integer gamma and the soft-target (exp(-bce)) path.
    x_m = jax.random.normal(k5, (40, 64), dtype=jnp.float32)
    t_m = jax.random.uniform(k2, (40, 64), dtype=jnp.float32)
    out = jax.block_until_ready(
        focal_loss(x_m, t_m, gamma=1.5, reduction="sum", soft_targets=True,
                   block_rows=8))
    ref = _focal_loss_ref(x_m, t_m, gamma=1.5, reduction="sum")
    assert jnp.allclose(out, ref, rtol=1e-5, atol=1e-5), (out, ref)

    print("KERNEL_OK")
</pallas_src>

<mosaic_0001>
module attributes {stable_mosaic.version = 11 : i64} {
  func.func @_focal_reduce_kernel(%arg0: i32, %arg1: i32, %arg2: memref<1x128xf32, #tpu.memory_space<vmem>>, %arg3: memref<1x128xf32, #tpu.memory_space<vmem>>, %arg4: memref<1x128xf32, #tpu.memory_space<vmem>>, %arg5: memref<1x128xf32, #tpu.memory_space<vmem>>) attributes {dimension_semantics = [#tpu.dimension_semantics<parallel>, #tpu.dimension_semantics<arbitrary>], iteration_bounds = array<i64: 1, 1>, scalar_prefetch = 0 : i64, scratch_operands = 1 : i64, tpu.core_type = #tpu.core_type<tc>, window_params = [{transform_indices = @transform_0, window_bounds = array<i64: 1, 128>}, {transform_indices = @transform_1, window_bounds = array<i64: 1, 128>}, {transform_indices = @transform_2, window_bounds = array<i64: 1, 128>}]} {
    %c0_i32 = arith.constant 0 : i32
    %0 = arith.cmpi eq, %arg1, %c0_i32 : i32
    %1 = arith.extui %0 : i1 to i32
    %c0_i32_0 = arith.constant 0 : i32
    %2 = arith.cmpi ne, %1, %c0_i32_0 : i32
    scf.if %2 {
      %cst_24 = arith.constant 0.000000e+00 : f32
      %59 = vector.broadcast %cst_24 : f32 to vector<1x128xf32>
      %c0_25 = arith.constant 0 : index
      %c0_26 = arith.constant 0 : index
      %60 = vector.load %arg5[%c0_25, %c0_26] : memref<1x128xf32, #tpu.memory_space<vmem>>, vector<1x128xf32>
      tpu.vector_store %arg5[%c0_25, %c0_26], %59 {strides = array<i32>} : memref<1x128xf32, #tpu.memory_space<vmem>>, vector<1x128xf32>,
    } else {
    }
    %c0 = arith.constant 0 : index
    %c0_1 = arith.constant 0 : index
    %3 = vector.load %arg2[%c0, %c0_1] : memref<1x128xf32, #tpu.memory_space<vmem>>, vector<1x128xf32>
    %c0_2 = arith.constant 0 : index
    %c0_3 = arith.constant 0 : index
    %4 = vector.load %arg3[%c0_2, %c0_3] : memref<1x128xf32, #tpu.memory_space<vmem>>, vector<1x128xf32>
    %5 = math.absf %3 : vector<1x128xf32>
    %cst = arith.constant 0.000000e+00 : f32
    %6 = vector.broadcast %cst : f32 to vector<1x128xf32>
    %7 = arith.subf %6, %5 : vector<1x128xf32>
    %8 = math.exp %7 : vector<1x128xf32>
    %cst_4 = arith.constant 0.000000e+00 : f32
    %9 = vector.broadcast %cst_4 : f32 to vector<1x128xf32>
    %10 = arith.maximumf %3, %9 : vector<1x128xf32>
    %11 = arith.mulf %3, %4 : vector<1x128xf32>
    %12 = arith.subf %10, %11 : vector<1x128xf32>
    %13 = math.log1p %8 : vector<1x128xf32>
    %14 = arith.addf %12, %13 : vector<1x128xf32>
    %cst_5 = arith.constant 1.000000e+00 : f32
    %15 = vector.broadcast %cst_5 : f32 to vector<1x128xf32>
    %16 = arith.addf %15, %8 : vector<1x128xf32>
    %cst_6 = arith.constant 1.000000e+00 : f32
    %17 = vector.broadcast %cst_6 : f32 to vector<1x128xf32>
    %18 = arith.divf %17, %16 : vector<1x128xf32>
    %cst_7 = arith.constant 0.000000e+00 : f32
    %19 = vector.broadcast %cst_7 : f32 to vector<1x128xf32>
    %20 = arith.cmpf oge, %3, %19 : vector<1x128xf32>
    %cst_8 = arith.constant 5.000000e-01 : f32
    %21 = vector.broadcast %cst_8 : f32 to vector<1x128xf32>
    %22 = arith.cmpf oge, %4, %21 : vector<1x128xf32>
    %cst_9 = arith.constant 1.000000e+00 : f32
    %23 = vector.broadcast %cst_9 : f32 to vector<1x128xf32>
    %24 = arith.select %22, %23, %8 : vector<1x128xi1>, vector<1x128xf32>
    %cst_10 = arith.constant 5.000000e-01 : f32
    %25 = vector.broadcast %cst_10 : f32 to vector<1x128xf32>
    %26 = arith.cmpf oge, %4, %25 : vector<1x128xf32>
    %cst_11 = arith.constant 1.000000e+00 : f32
    %27 = vector.broadcast %cst_11 : f32 to vector<1x128xf32>
    %28 = arith.select %26, %8, %27 : vector<1x128xi1>, vector<1x128xf32>
    %29 = arith.select %20, %24, %28 : vector<1x128xi1>, vector<1x128xf32>
    %30 = arith.mulf %29, %18 : vector<1x128xf32>
    %cst_12 = arith.constant 1.000000e+00 : f32
    %31 = vector.broadcast %cst_12 : f32 to vector<1x128xf32>
    %32 = arith.subf %31, %30 : vector<1x128xf32>
    %33 = arith.mulf %32, %32 : vector<1x128xf32>
    %c1_i32 = arith.constant 1 : i32
    %34 = arith.muli %arg0, %c1_i32 : i32
    %35 = arith.addi %34, %arg1 : i32
    %c0_i32_13 = arith.constant 0 : i32
    %36 = arith.minsi %35, %c0_i32_13 : i32
    %c128_i32 = arith.constant 128 : i32
    %37 = arith.muli %36, %c128_i32 : i32
    %38 = tpu.iota {dimensions = array<i32: 0>} : vector<1x128xi32>
    %c128_i32_14 = arith.constant 128 : i32
    %39 = vector.broadcast %c128_i32_14 : i32 to vector<1x128xi32>
    %40 = arith.muli %38, %39 : vector<1x128xi32>
    %41 = vector.broadcast %37 : i32 to vector<1x128xi32>
    %42 = arith.addi %41, %40 : vector<1x128xi32>
    %43 = tpu.iota {dimensions = array<i32: 1>} : vector<1x128xi32>
    %44 = arith.addi %42, %43 : vector<1x128xi32>
    %c128_i32_15 = arith.constant 128 : i32
    %45 = vector.broadcast %c128_i32_15 : i32 to vector<1x128xi32>
    %46 = arith.cmpi slt, %44, %45 : vector<1x128xi32>
    %c1_i32_16 = arith.constant 1 : i32
    %47 = arith.cmpi slt, %35, %c1_i32_16 : i32
    %48 = vector.broadcast %47 : i1 to vector<1x128xi1>
    %49 = arith.andi %46, %48 : vector<1x128xi1>
    %50 = arith.mulf %33, %14 : vector<1x128xf32>
    %cst_17 = arith.constant 0.000000e+00 : f32
    %51 = vector.broadcast %cst_17 : f32 to vector<1x128xf32>
    %52 = arith.select %49, %50, %51 : vector<1x128xi1>, vector<1x128xf32>
    %c0_18 = arith.constant 0 : index
    %c0_19 = arith.constant 0 : index
    %53 = vector.load %arg5[%c0_18, %c0_19] : memref<1x128xf32, #tpu.memory_space<vmem>>, vector<1x128xf32>
    %54 = arith.addf %53, %52 : vector<1x128xf32>
    %c0_20 = arith.constant 0 : index
    %c0_21 = arith.constant 0 : index
    %55 = vector.load %arg5[%c0_20, %c0_21] : memref<1x128xf32, #tpu.memory_space<vmem>>, vector<1x128xf32>
    tpu.vector_store %arg5[%c0_20, %c0_21], %54 {strides = array<i32>} : memref<1x128xf32, #tpu.memory_space<vmem>>, vector<1x128xf32>,
    %c0_i32_22 = arith.constant 0 : i32
    %56 = arith.cmpi eq, %arg1, %c0_i32_22 : i32
    %57 = arith.extui %56 : i1 to i32
    %c0_i32_23 = arith.constant 0 : i32
    %58 = arith.cmpi ne, %57, %c0_i32_23 : i32
    scf.if %58 {
      %c0_24 = arith.constant 0 : index
      %c0_25 = arith.constant 0 : index
      %59 = vector.load %arg5[%c0_24, %c0_25] : memref<1x128xf32, #tpu.memory_space<vmem>>, vector<1x128xf32>
      %c0_26 = arith.constant 0 : index
      %c0_27 = arith.constant 0 : index
      %60 = vector.load %arg4[%c0_26, %c0_27] : memref<1x128xf32, #tpu.memory_space<vmem>>, vector<1x128xf32>
      tpu.vector_store %arg4[%c0_26, %c0_27], %59 {strides = array<i32>} : memref<1x128xf32, #tpu.memory_space<vmem>>, vector<1x128xf32>,
    } else {
    }
    return
  }
  func.func @transform_0(%arg0: i32, %arg1: i32) -> (i32, i32) {
    %c1_i32 = arith.constant 1 : i32
    %0 = arith.muli %arg0, %c1_i32 : i32
    %1 = arith.addi %0, %arg1 : i32
    %c0_i32 = arith.constant 0 : i32
    %2 = arith.minsi %1, %c0_i32 : i32
    %c0_i32_0 = arith.constant 0 : i32
    %c0_i32_1 = arith.constant 0 : i32
    return %2, %c0_i32_0 : i32, i32
  }
  func.func @transform_1(%arg0: i32, %arg1: i32) -> (i32, i32) {
    %c1_i32 = arith.constant 1 : i32
    %0 = arith.muli %arg0, %c1_i32 : i32
    %1 = arith.addi %0, %arg1 : i32
    %c0_i32 = arith.constant 0 : i32
    %2 = arith.minsi %1, %c0_i32 : i32
    %c0_i32_0 = arith.constant 0 : i32
    %c0_i32_1 = arith.constant 0 : i32
    return %2, %c0_i32_0 : i32, i32
  }
  func.func @transform_2(%arg0: i32, %arg1: i32) -> (i32, i32) {
    %c0_i32 = arith.constant 0 : i32
    %c0_i32_0 = arith.constant 0 : i32
    return %arg0, %c0_i32 : i32, i32
  }
}

</mosaic_0001>

<bundles_post_ra>
// kernel: tpu_custom_call.1
= control target key start
LH: loop header
LB: loop body
LE: loop exit
PB: predicated region body
PF: predicated region fallthrough
CT: control target
= control target key end

     0   :  { %7 = vsyncpa [#allocation4], 0  ;;  %s219_s0 = inlined_call_operand.hbm [shape: f32[1,128], index: 0, kind: input, shape index: {}]   ;;  %s220_s1 = inlined_call_operand.vmem [shape: f32[1,128], index: 1, kind: input, shape index: {}]   ;;  %s221_s2 = inlined_call_operand.hbm [shape: f32[1,128], index: 2, kind: output, shape index: {}]  }
   0x1   :  { %8 = vsyncpa [#allocation5], 0  ;;  %s192_s9 = smov [#allocation3]  }
   0x2   :  { %s20_s10 = sshll.u32 %s192_s9, 4  ;;  %s21_s10 = int_to_ptr.vmem [resolvable:$true] %s20_s10 }
   0x3   :  { %s156_s11 = scalar_lea.vmem %s21_s10, 16  ;;  %s160_s12 = scalar_lea.vmem %s21_s10, 32 }
   0x4   :  { %p157_p0 = scmp.ne.s32.totalorder %s21_s10, %s156_s11  ;;  %p161_p1 = scmp.lt.s32.totalorder %s21_s10, %s21_s10 }
   0x5   :  { %p162_p2 = scmp.lt.s32.totalorder %s160_s12, %s156_s11 }
   0x7   :  { %p163_p3 = por %p162_p2, %p161_p1 }
   0x9   :  { %p164_p4 = pnand %p163_p3, %p157_p0 }
   0xb   :  { %167 = shalt.err (!%p164_p4)
}
   0xc   :  { %23 = dma.hbm_to_vmem [thread:$0]  %s219_s0, 16, %s21_s10, [#allocation4]  }
   0xd   :  { %188 = dma.done.wait [#allocation4], 16  }
   0xe   :  { %189 = vsyncadd [#allocation4], 4294967280  ;;  %v193_v0 = vmov 0.0   ;;  %v61_v1 = vld [vmem:[#allocation3] sm:$0x1]  ;;  %v95_v9 = vlaneseq  ;;  %s194_s0 = smov [#allocation6]  }
   0xf   :  { %60 = vst [vmem:[#allocation2] sm:$0x1] %v193_v0  ;;  %v63_v2 = vand.u32 2147483647, %v61_v1  ;;  %v62_v7 = vld [vmem:[%s220_s1] sm:$0x1] }
  0x10   :  { %vm84_vm0 = vcmp.ge.f32.partialorder %v62_v7, 0.5  ;;  %v67_v10 = vmax.f32 %v61_v1, 0.0  ;;  %v68_v11 = vmul.f32 %v62_v7, %v61_v1  ;;  %v96_v13 = vshrl.u32 %v95_v9, 7  ;;  %s125_s1 = sshll.u32 %s194_s0, 4  ;;  %s126_s1 = int_to_ptr.vmem [resolvable:$true] %s125_s1 }
  0x11   :  { %v64_v3 = vsub.f32 0.0, %v63_v2  ;;  %vm83_vm1 = vcmp.ge.f32.partialorder %v61_v1, 0.0  ;;  %v101_v20 = vand.u32 127, %v95_v9  ;;  %s168_s17 = scalar_lea.vmem %s126_s1, 16  ;;  %s172_s18 = scalar_lea.vmem %s126_s1, 32 }
  0x12   :  { %v97_v19 = vmul.u32 128, %v96_v13  ;;  %v69_v22 = vsub.f32 %v67_v10, %v68_v11  ;;  %p169_p5 = scmp.ne.s32.totalorder %s126_s1, %s168_s17  ;;  %p173_p6 = scmp.lt.s32.totalorder %s126_s1, %s126_s1 }
  0x13   :  { %v65_v4 = vmul.f32 1.442695, %v64_v3  ;;  %p174_p7 = scmp.lt.s32.totalorder %s172_s18, %s168_s17 }
  0x14   :  { %v102_v27 = vadd.s32 %v101_v20, %v97_v19 }
  0x15   :  { %142 = vpow2.f32 %v65_v4  ;;  %p175_p8 = por %p174_p7, %p173_p6 }
  0x16   :  { %vm103_vm3 = vcmp.lt.s32.totalorder %v102_v27, 128  ;;  %v111_v32 = vld [vmem:[#allocation2] sm:$0x1] }
  0x17   :  { %p176_p9 = pnand %p175_p8, %p169_p5 }
  0x22   :  { %v143_v5 = vpop.eup %142 }
  0x23   :  { %v70_v6 = vadd.f32 1.0, %v143_v5  ;;  %v73_v8 = vmul.f32 -0.5, %v143_v5  ;;  %v76_v14 = vand.u32 2147483647, %v143_v5  ;;  %v85_v15 = vsel %vm84_vm0, 1.0, %v143_v5 }
  0x24   :  { %v86_v16 = vsel %vm84_vm0, %v143_v5, 1.0 }
  0x25   :  { %144 = vlog2.f32 %v70_v6  ;;  %v74_v12 = vadd.f32 1.0, %v73_v8  ;;  %v87_v18 = vsel %vm83_vm1, %v85_v15, %v86_v16  ;;  %vm77_vm2 = vcmp.lt.f32.partialorder %v76_v14, 0.0004427343 }
  0x26   :  { %146 = vrcp.f32 %v70_v6 }
  0x27   :  { %v75_v17 = vmul.f32 %v143_v5, %v74_v12 }
  0x32   :  { %v145_v21 = vpop.eup %144 }
  0x33   :  { %v147_v23 = vpop.eup %146  ;;  %v72_v24 = vmul.f32 0.6931472, %v145_v21 }
  0x34   :  { %v88_v25 = vmul.f32 %v147_v23, %v87_v18 }
  0x35   :  { %v78_v26 = vsel %vm77_vm2, %v75_v17, %v72_v24 }
  0x36   :  { %v79_v28 = vadd.f32 %v78_v26, %v69_v22  ;;  %v89_v29 = vsub.f32 1.0, %v88_v25 }
  0x38   :  { %v90_v30 = vmul.f32 %v89_v29, %v89_v29 }
  0x3a   :  { %v109_v31 = vmul.f32 %v90_v30, %v79_v28 }
  0x3c   :  { %v110_v33 = vsel %vm103_vm3, %v109_v31, 0.0 }
  0x3d   :  { %v112_v34 = vadd.f32 %v111_v32, %v110_v33 }
  0x3f   :  { %113 = vst [vmem:[#allocation2] sm:$0x1] %v112_v34 }
  0x46   :  { %v117_v35 = vld [vmem:[#allocation2] sm:$0x1] }
  0x47   :  { %118 = vst [vmem:[#allocation6] sm:$0x1] %v117_v35 }
  0x48   :  { %179 = shalt.err (!%p176_p9)
}
  0x49   :  { %128 = dma.vmem_to_hbm [thread:$0]  %s126_s1, 16, %s221_s2, [#allocation5]  }
  0x4a   :  { %190 = dma.done.wait [#allocation5], 16  }
  0x4b   :  { %191 = vsyncadd [#allocation5], 4294967280 }
  0x4c   :  { %132 = vsyncpa [#allocation4], 1 }
  0x4d   :  { %133 = vsyncpa [#allocation5], 1 }

</bundles_post_ra>
